<compile_context>
chip_gen: v7x
topology: tpu7x:2x2x1
jax: 0.10.0
libtpu: 0.0.40
codegen_flags: <defaults>
</compile_context>

<pallas_src>
import functools
import math

import jax
import jax.numpy as jnp
from jax.experimental import pallas as pl
from jax.experimental.pallas import tpu as pltpu

LN_EPS = 1e-5                 # torch.nn.LayerNorm default
_VMEM_BUDGET = 32 << 20       # resident VMEM target; safe under v7x's 64 MiB physical VMEM


def _round_up(x, m):
    return ((x + m - 1) // m) * m


def _embed_ln_kernel(x_ref, p_ref, add_ref, o_ref):
    """Fused: pointwise Conv1d (outer product) + additive embeddings + LayerNorm.

    x_ref:   (TB, TL, 1)  scalar series (0.0 at the cls position)
    p_ref:   (3, H)       row 0 = conv weight, row 1 = LN gamma, row 2 = LN beta
    add_ref: (TL, H)      pos_emb + type_emb + (conv bias for l>0, cls_token for l=0)
    o_ref:   (TB, TL, H)
    """
    x = x_ref[...]                                        # (TB, TL, 1)
    w = p_ref[0:1, :]                                     # (1, H)
    gamma = p_ref[1:2, :]                                 # (1, H)
    beta = p_ref[2:3, :]                                  # (1, H)

    # Conv1d(kernel_size=1, 1 input channel) == outer product, plus all additive terms.
    pre = x * w[None, :, :] + add_ref[...][None, :, :]    # (TB, TL, H)

    # One-pass LayerNorm over H (biased variance, like torch).  E[x^2] - mean^2 avoids keeping
    # a `centered` block-scale temporary live across the two lane reductions; inputs are O(1)
    # after pe/type/bias, so the cancellation is numerically benign.
    mean = jnp.mean(pre, axis=-1, keepdims=True)          # (TB, TL, 1)
    msq = jnp.mean(pre * pre, axis=-1, keepdims=True)     # (TB, TL, 1)
    var = jnp.maximum(msq - mean * mean, 0.0)
    inv = jax.lax.rsqrt(var + LN_EPS)
    out = (pre - mean) * inv * gamma[None, :, :] + beta[None, :, :]

    o_ref[...] = out.astype(o_ref.dtype)


def sincos_positional_encoding(length, d_model):
    position = jnp.arange(length, dtype=jnp.float32)[:, None]            # (L, 1)
    div_term = jnp.exp(jnp.arange(0, d_model, 2, dtype=jnp.float32)
                       * (-math.log(10000.0) / d_model))                 # (H/2,)
    pe = jnp.zeros((length, d_model), dtype=jnp.float32)
    pe = pe.at[:, 0::2].set(jnp.sin(position * div_term))
    pe = pe.at[:, 1::2].set(jnp.cos(position * div_term))
    return pe


def init_params(key, hidden_size):
    k_w, k_b, k_tte = jax.random.split(key, 3)
    # Conv1d(1, H, kernel_size=1): weight (H,1,1), bias (H,) -- fan_in = 1 -> bound = 1
    bound = 1.0
    w = jax.random.uniform(k_w, (hidden_size,), jnp.float32, -bound, bound)
    b = jax.random.uniform(k_b, (hidden_size,), jnp.float32, -bound, bound)
    tte = jax.random.uniform(k_tte, (hidden_size,), jnp.float32, 0.0, 1.0)  # torch.rand
    cls = jnp.zeros((hidden_size,), jnp.float32)                            # torch.zeros
    gamma = jnp.ones((hidden_size,), jnp.float32)
    beta = jnp.zeros((hidden_size,), jnp.float32)
    return dict(w=w, b=b, tte=tte, cls=cls, gamma=gamma, beta=beta)


def _block_costs(TL, H, out_itemsize):
    """Padded VMEM bytes: (per-batch-row cost, add-table cost, param-slab cost)."""
    Hp = _round_up(H, 128)
    TLp = _round_up(TL, 8)
    out_blk = TLp * Hp * out_itemsize        # one output buffer row
    f32_blk = TLp * Hp * 4                   # in-kernel f32 temporaries (pre / normalized)
    xe_blk = TLp * 128 * 4                   # (TL, 1) block lane-pads to 128
    row = 2 * (out_blk + xe_blk) + 2 * f32_blk   # double-buffered DMA blocks + block temps
    add = 2 * TLp * Hp * 4
    pslab = 2 * 8 * Hp * 4
    return row, add, pslab


def _choose_tiles(B, Lp, H, out_itemsize):
    """Pick (TB, TL) so the resident footprint stays within _VMEM_BUDGET."""
    row, add, pslab = _block_costs(Lp, H, out_itemsize)
    if row + add + pslab <= _VMEM_BUDGET:
        TL = Lp
        TB = int(max(1, min(B, (_VMEM_BUDGET - add - pslab) // row)))
    else:
        # Sequence tiling: one batch row at a time, TL a multiple of 8 (ragged tail is masked).
        TB = 1
        row8, add8, pslab8 = _block_costs(8, H, out_itemsize)
        per8 = row8 + add8
        TL = int(max(8, min((Lp // 8) * 8, ((_VMEM_BUDGET - pslab8) // max(per8, 1)) * 8)))
    return TB, TL


def _vmem_limit_bytes(TB, TL, H, out_itemsize):
    row, add, pslab = _block_costs(TL, H, out_itemsize)
    total = TB * row + add + pslab
    return int(min(max(total + total // 4, 16 << 20), 44 << 20))


@functools.partial(jax.jit, static_argnames=("out_dtype",))
def data_embedding_forward(x, params, out_dtype=jnp.float32):
    """x: (B, L) float32 -> (B, L+1, H).

    out_dtype=jnp.bfloat16 halves the dominant HBM write traffic when downstream consumers
    accept it; the default f32 matches the PyTorch module.
    """
    B, L = x.shape
    H = params["w"].shape[0]
    assert H % 2 == 0, "sincos positional encoding requires even hidden_size"
    Lp = L + 1
    out_itemsize = jnp.dtype(out_dtype).itemsize

    # --- parameter glue (tiny vs. the (B, Lp, H) output; fused into this jit) ---
    # Per-position additive term:
    #   l == 0 : cls_token + pe[0] + type_emb   (x contributes 0 at the cls slot)
    #   l >= 1 : conv_bias + pe[l] + type_emb
    pe = sincos_positional_encoding(Lp, H)                                  # (Lp, H)
    bias_rows = jnp.concatenate(
        [params["cls"][None, :], jnp.broadcast_to(params["b"][None, :], (L, H))], axis=0)
    add = (pe + params["tte"][None, :] + bias_rows).astype(jnp.float32)     # (Lp, H)

    # One parameter slab instead of three (1, H) inputs.
    pslab = jnp.stack([params["w"], params["gamma"], params["beta"]], axis=0)  # (3, H)

    # Extended scalar series: position 0 is the cls slot (contributes nothing via the conv).
    xe = jnp.concatenate([jnp.zeros((B, 1), jnp.float32), x.astype(jnp.float32)],
                         axis=1)[:, :, None]                                 # (B, Lp, 1)

    # --- tiling: batch blocks, plus Lp blocks only when one row's plane would blow VMEM ---
    TB, TL = _choose_tiles(B, Lp, H, out_itemsize)
    n_b = pl.cdiv(B, TB)      # ragged final batch block (if any) is masked: no padding,
    n_l = pl.cdiv(Lp, TL)     # no out[:B] copy.

    out = pl.pallas_call(
        _embed_ln_kernel,
        out_shape=jax.ShapeDtypeStruct((B, Lp, H), out_dtype),
        grid=(n_b, n_l),
        in_specs=[
            pl.BlockSpec((TB, TL, 1), lambda b, l: (b, l, 0)),   # xe
            pl.BlockSpec((3, H),      lambda b, l: (0, 0)),      # w / gamma / beta slab
            pl.BlockSpec((TL, H),     lambda b, l: (l, 0)),      # additive table
        ],
        out_specs=pl.BlockSpec((TB, TL, H), lambda b, l: (b, l, 0)),
        compiler_params=pltpu.CompilerParams(
            # LayerNorm is per-position, so both axes are independent.
            dimension_semantics=("parallel", "parallel"),
            vmem_limit_bytes=_vmem_limit_bytes(TB, TL, H, out_itemsize),
        ),
    )(xe, pslab, add)

    return out


def data_embedding_reference(x, params):
    """Pure-JAX reference mirroring the PyTorch forward (eval mode)."""
    B, L = x.shape
    H = params["w"].shape[0]
    conv = x[:, :, None] * params["w"][None, None, :] + params["b"][None, None, :]  # (B,L,H)
    cls = jnp.broadcast_to(params["cls"][None, None, :], (B, 1, H))
    y = jnp.concatenate([cls, conv], axis=1)                                        # (B,L+1,H)
    y = y + sincos_positional_encoding(L + 1, H)[None, :, :]
    y = y + params["tte"][None, None, :]
    mean = jnp.mean(y, axis=-1, keepdims=True)
    var = jnp.mean((y - mean) ** 2, axis=-1, keepdims=True)
    y = (y - mean) * jax.lax.rsqrt(var + LN_EPS)
    y = y * params["gamma"] + params["beta"]
    return y  # dropout == identity at inference


if __name__ == "__main__":
    # H=128 keeps the output last (lane) dim dense; small B/L run as a single big block.
    B, L, H = 4, 16, 128
    key = jax.random.PRNGKey(0)
    k_x, k_p = jax.random.split(key)
    x = jax.random.normal(k_x, (B, L), jnp.float32)
    params = init_params(k_p, H)

    out = data_embedding_forward(x, params)
    out = jax.block_until_ready(out)

    ref = data_embedding_reference(x, params)
    assert out.shape == (B, L + 1, H)
    assert jnp.allclose(out, ref, atol=1e-4, rtol=1e-4), "mismatch vs reference"
    print("KERNEL_OK")
</pallas_src>

<mosaic_0001>
module attributes {stable_mosaic.version = 11 : i64} {
  func.func @_embed_ln_kernel(%arg0: i32, %arg1: i32, %arg2: memref<4x17x1xf32, #tpu.memory_space<vmem>>, %arg3: memref<3x128xf32, #tpu.memory_space<vmem>>, %arg4: memref<17x128xf32, #tpu.memory_space<vmem>>, %arg5: memref<4x17x128xf32, #tpu.memory_space<vmem>>) attributes {dimension_semantics = [#tpu.dimension_semantics<parallel>, #tpu.dimension_semantics<parallel>], iteration_bounds = array<i64: 1, 1>, scalar_prefetch = 0 : i64, scratch_operands = 0 : i64, tpu.core_type = #tpu.core_type<tc>, window_params = [{transform_indices = @transform_0, window_bounds = array<i64: 4, 17, 1>}, {pipeline_mode = #tpu.pipeline_mode<synchronous>, transform_indices = @transform_1, window_bounds = array<i64: 3, 128>}, {transform_indices = @transform_2, window_bounds = array<i64: 17, 128>}, {transform_indices = @transform_3, window_bounds = array<i64: 4, 17, 128>}]} {
    %c0 = arith.constant 0 : index
    %c0_0 = arith.constant 0 : index
    %c0_1 = arith.constant 0 : index
    %0 = vector.load %arg2[%c0, %c0_0, %c0_1] : memref<4x17x1xf32, #tpu.memory_space<vmem>>, vector<4x17x1xf32>
    %c0_2 = arith.constant 0 : index
    %c0_3 = arith.constant 0 : index
    %1 = vector.load %arg3[%c0_2, %c0_3] : memref<3x128xf32, #tpu.memory_space<vmem>>, vector<1x128xf32>
    %c1 = arith.constant 1 : index
    %c0_4 = arith.constant 0 : index
    %2 = vector.load %arg3[%c1, %c0_4] : memref<3x128xf32, #tpu.memory_space<vmem>>, vector<1x128xf32>
    %c2 = arith.constant 2 : index
    %c0_5 = arith.constant 0 : index
    %3 = vector.load %arg3[%c2, %c0_5] : memref<3x128xf32, #tpu.memory_space<vmem>>, vector<1x128xf32>
    %4 = vector.shape_cast %1 : vector<1x128xf32> to vector<1x1x128xf32>
    %5 = vector.broadcast %0 : vector<4x17x1xf32> to vector<4x17x128xf32>
    %6 = vector.broadcast %4 : vector<1x1x128xf32> to vector<4x17x128xf32>
    %7 = arith.mulf %5, %6 : vector<4x17x128xf32>
    %c0_6 = arith.constant 0 : index
    %c0_7 = arith.constant 0 : index
    %8 = vector.load %arg4[%c0_6, %c0_7] : memref<17x128xf32, #tpu.memory_space<vmem>>, vector<17x128xf32>
    %9 = vector.shape_cast %8 : vector<17x128xf32> to vector<1x17x128xf32>
    %10 = vector.broadcast %9 : vector<1x17x128xf32> to vector<4x17x128xf32>
    %11 = arith.addf %7, %10 : vector<4x17x128xf32>
    %cst = arith.constant dense<0.000000e+00> : vector<4x17xf32>
    %12 = vector.multi_reduction <add>, %11, %cst [2] : vector<4x17x128xf32> to vector<4x17xf32>
    %13 = vector.shape_cast %12 : vector<4x17xf32> to vector<4x17x1xf32>
    %cst_8 = arith.constant 1.280000e+02 : f32
    %14 = vector.broadcast %cst_8 : f32 to vector<4x17x1xf32>
    %15 = arith.divf %13, %14 : vector<4x17x1xf32>
    %16 = arith.mulf %11, %11 : vector<4x17x128xf32>
    %cst_9 = arith.constant dense<0.000000e+00> : vector<4x17xf32>
    %17 = vector.multi_reduction <add>, %16, %cst_9 [2] : vector<4x17x128xf32> to vector<4x17xf32>
    %18 = vector.shape_cast %17 : vector<4x17xf32> to vector<4x17x1xf32>
    %cst_10 = arith.constant 1.280000e+02 : f32
    %19 = vector.broadcast %cst_10 : f32 to vector<4x17x1xf32>
    %20 = arith.divf %18, %19 : vector<4x17x1xf32>
    %21 = arith.mulf %15, %15 : vector<4x17x1xf32>
    %22 = arith.subf %20, %21 : vector<4x17x1xf32>
    %cst_11 = arith.constant 0.000000e+00 : f32
    %23 = vector.broadcast %cst_11 : f32 to vector<4x17x1xf32>
    %24 = arith.maximumf %22, %23 : vector<4x17x1xf32>
    %cst_12 = arith.constant 9.99999974E-6 : f32
    %25 = vector.broadcast %cst_12 : f32 to vector<4x17x1xf32>
    %26 = arith.addf %24, %25 : vector<4x17x1xf32>
    %27 = math.rsqrt %26 : vector<4x17x1xf32>
    %28 = vector.broadcast %15 : vector<4x17x1xf32> to vector<4x17x128xf32>
    %29 = arith.subf %11, %28 : vector<4x17x128xf32>
    %30 = vector.broadcast %27 : vector<4x17x1xf32> to vector<4x17x128xf32>
    %31 = arith.mulf %29, %30 : vector<4x17x128xf32>
    %32 = vector.shape_cast %2 : vector<1x128xf32> to vector<1x1x128xf32>
    %33 = vector.broadcast %32 : vector<1x1x128xf32> to vector<4x17x128xf32>
    %34 = arith.mulf %31, %33 : vector<4x17x128xf32>
    %35 = vector.shape_cast %3 : vector<1x128xf32> to vector<1x1x128xf32>
    %36 = vector.broadcast %35 : vector<1x1x128xf32> to vector<4x17x128xf32>
    %37 = arith.addf %34, %36 : vector<4x17x128xf32>
    %c0_13 = arith.constant 0 : index
    %c0_14 = arith.constant 0 : index
    %c0_15 = arith.constant 0 : index
    %38 = vector.load %arg5[%c0_13, %c0_14, %c0_15] : memref<4x17x128xf32, #tpu.memory_space<vmem>>, vector<4x17x128xf32>
    tpu.vector_store %arg5[%c0_13, %c0_14, %c0_15], %37 {strides = array<i32>} : memref<4x17x128xf32, #tpu.memory_space<vmem>>, vector<4x17x128xf32>,
    return
  }
  func.func @transform_0(%arg0: i32, %arg1: i32) -> (i32, i32, i32) {
    %c0_i32 = arith.constant 0 : i32
    %c0_i32_0 = arith.constant 0 : i32
    return %arg0, %arg1, %c0_i32 : i32, i32, i32
  }
  func.func @transform_1(%arg0: i32, %arg1: i32) -> (i32, i32) {
    %c0_i32 = arith.constant 0 : i32
    %c0_i32_0 = arith.constant 0 : i32
    %c0_i32_1 = arith.constant 0 : i32
    return %c0_i32, %c0_i32_0 : i32, i32
  }
  func.func @transform_2(%arg0: i32, %arg1: i32) -> (i32, i32) {
    %c0_i32 = arith.constant 0 : i32
    %c0_i32_0 = arith.constant 0 : i32
    return %arg1, %c0_i32 : i32, i32
  }
  func.func @transform_3(%arg0: i32, %arg1: i32) -> (i32, i32, i32) {
    %c0_i32 = arith.constant 0 : i32
    %c0_i32_0 = arith.constant 0 : i32
    return %arg0, %arg1, %c0_i32 : i32, i32, i32
  }
}

</mosaic_0001>

<bundles_post_ra>
// kernel: data_embedding_forward.1
= control target key start
LH: loop header
LB: loop body
LE: loop exit
PB: predicated region body
PF: predicated region fallthrough
CT: control target
= control target key end

     0   :  { %v376_v0 = vmov 0   ;;  %vm124_vm0 = vcmask 1040384   ;;  %s661_s0 = inlined_call_operand.vmem [shape: f32[4,17,1], index: 0, kind: input, shape index: {}]   ;;  %s662_s1 = inlined_call_operand.vmem [shape: f32[3,128], index: 1, kind: input, shape index: {}]   ;;  %s663_s2 = inlined_call_operand.vmem [shape: f32[17,128], index: 2, kind: input, shape index: {}]   ;;  %s664_s3 = inlined_call_operand.vmem [shape: f32[4,17,128], index: 3, kind: output, shape index: {}]  }
   0x1   :  { %351 = vset.pattern.permute.xlu1 %v376_v0  ;;  %350 = vset.pattern.permute.xlu0 %v376_v0  ;;  %v22_v1 = vld [vmem:[%s661_s0 + $0x40] sm:$0x1]  ;;  %v16_v2 = vld [vmem:[%s661_s0 + $0x10] sm:$0x1]  ;;  %v25_v3 = vld [vmem:[%s661_s0 + $0x58] sm:$0x1] }
   0x2   :  { %71 = vperm.xlu1 %351, %v22_v1   ;;  %41 = vperm.xlu0 %350, %v16_v2   ;;  %v19_v4 = vld [vmem:[%s661_s0 + $0x28] sm:$0x1]  ;;  %v14_v6 = vld [vmem:[%s661_s0] sm:$0xff]  ;;  %v17_v8 = vld [vmem:[%s661_s0 + $0x18] sm:$0xff] }
   0x3   :  { %v15_v5 = vld [vmem:[%s661_s0 + $0x8] sm:$0xff]  ;;  %v18_v7 = vld [vmem:[%s661_s0 + $0x20] sm:$0xff]  ;;  %v21_v9 = vld [vmem:[%s661_s0 + $0x38] sm:$0xff] }
   0x4   :  { %v20_v10 = vld [vmem:[%s661_s0 + $0x30] sm:$0xff]  ;;  %v23_v12 = vld [vmem:[%s661_s0 + $0x48] sm:$0xff]  ;;  %v346_v17 = vld [vmem:[%s662_s1] ss:$0 sm:$0xff] }
   0x5   :  { %v24_v11 = vld [vmem:[%s661_s0 + $0x50] sm:$0xff]  ;;  %v106_v18 = vld [vmem:[%s663_s2 + $0x8] sm:$0xff]  ;;  %v105_v20 = vld [vmem:[%s663_s2] sm:$0xff] }
   0x6   :  { %86 = vperm.xlu1 %351, %v25_v3   ;;  %56 = vperm.xlu0 %350, %v19_v4   ;;  %v107_v42 = vld [vmem:[%s663_s2 + $0x10] sm:$0x1] }
   0xa   :  { %36 = vperm.xlu1 %351, %v15_v5   ;;  %31 = vperm.xlu0 %350, %v14_v6  }
   0xe   :  { %51 = vperm.xlu1 %351, %v18_v7   ;;  %46 = vperm.xlu0 %350, %v17_v8  }
  0x12   :  { %66 = vperm.xlu1 %351, %v21_v9   ;;  %61 = vperm.xlu0 %350, %v20_v10  }
  0x16   :  { %81 = vperm.xlu1 %351, %v24_v11   ;;  %76 = vperm.xlu0 %350, %v23_v12  }
  0x81   :  { %v72_v13 = vpop.permute.xlu1 %71  ;;  %v42_v14 = vpop.permute.xlu0 %41 }
  0x82   :  { %v101_v38 = vmul.f32 %v346_v17, %v72_v13  ;;  %v95_v39 = vmul.f32 %v346_v17, %v42_v14 }
  0x84   :  { %v467_v47 = vadd.f32 %v107_v42, %v101_v38  ;;  %v469_v48 = vadd.f32 %v107_v42, %v95_v39 }
  0x85   :  { %v87_v15 = vpop.permute.xlu1 %86  ;;  %v57_v16 = vpop.permute.xlu0 %56 }
  0x86   :  { %v98_v49 = vmul.f32 %v346_v17, %v57_v16  ;;  %v104_v50 = vmul.f32 %v346_v17, %v87_v15  ;;  %v139_v52 = vsel %vm124_vm0, %v467_v47, 0.0  ;;  %v125_v53 = vsel %vm124_vm0, %v469_v48, 0.0 }
  0x87   :  { %v164_v61 = vmul.f32 %v469_v48, %v469_v48  ;;  %v170_v0 = vmul.f32 %v467_v47, %v467_v47 }
  0x88   :  { %v473_v51 = vadd.f32 %v107_v42, %v98_v49  ;;  %v481_v55 = vadd.f32 %v107_v42, %v104_v50 }
  0x89   :  { %v37_v19 = vpop.permute.xlu1 %36  ;;  %v32_v21 = vpop.permute.xlu0 %31  ;;  %v178_v63 = vsel %vm124_vm0, %v164_v61, 0.0  ;;  %v192_v2 = vsel %vm124_vm0, %v170_v0, 0.0 }
  0x8a   :  { %v94_v22 = vmul.f32 %v346_v17, %v37_v19  ;;  %v93_v23 = vmul.f32 %v346_v17, %v32_v21  ;;  %v132_v56 = vsel %vm124_vm0, %v473_v51, 0.0  ;;  %v146_v58 = vsel %vm124_vm0, %v481_v55, 0.0 }
  0x8b   :  { %v167_v5 = vmul.f32 %v473_v51, %v473_v51  ;;  %v173_v7 = vmul.f32 %v481_v55, %v481_v55 }
  0x8c   :  { %v442_v24 = vadd.f32 %v106_v18, %v94_v22  ;;  %v444_v25 = vadd.f32 %v105_v20, %v93_v23 }
  0x8d   :  { %v52_v26 = vpop.permute.xlu1 %51  ;;  %v47_v27 = vpop.permute.xlu0 %46  ;;  %v185_v6 = vsel %vm124_vm0, %v167_v5, 0.0  ;;  %v199_v8 = vsel %vm124_vm0, %v173_v7, 0.0 }
  0x8e   :  { %v97_v28 = vmul.f32 %v346_v17, %v52_v26  ;;  %v96_v29 = vmul.f32 %v346_v17, %v47_v27  ;;  %122 = vadd.xlane.f32.xlu1 %v442_v24  ;;  %120 = vadd.xlane.f32.xlu0 %v444_v25  ;;  %v162_v54 = vmul.f32 %v444_v25, %v444_v25 }
  0x8f   :  { %v163_v60 = vmul.f32 %v442_v24, %v442_v24 }
  0x90   :  { %v448_v30 = vadd.f32 %v106_v18, %v97_v28  ;;  %v450_v31 = vadd.f32 %v105_v20, %v96_v29 }
  0x91   :  { %v67_v32 = vpop.permute.xlu1 %66  ;;  %v62_v33 = vpop.permute.xlu0 %61 }
  0x92   :  { %v100_v34 = vmul.f32 %v346_v17, %v67_v32  ;;  %v99_v35 = vmul.f32 %v346_v17, %v62_v33  ;;  %130 = vadd.xlane.f32.xlu1 %v448_v30  ;;  %128 = vadd.xlane.f32.xlu0 %v450_v31  ;;  %v166_v57 = vmul.f32 %v448_v30, %v448_v30 }
  0x93   :  { %v165_v62 = vmul.f32 %v450_v31, %v450_v31 }
  0x94   :  { %v454_v36 = vadd.f32 %v106_v18, %v100_v34  ;;  %v456_v37 = vadd.f32 %v105_v20, %v99_v35 }
  0x95   :  { %v82_v40 = vpop.permute.xlu1 %81  ;;  %v77_v41 = vpop.permute.xlu0 %76 }
  0x96   :  { %v103_v43 = vmul.f32 %v346_v17, %v82_v40  ;;  %v102_v44 = vmul.f32 %v346_v17, %v77_v41  ;;  %137 = vadd.xlane.f32.xlu0 %v454_v36  ;;  %135 = vadd.xlane.f32.xlu1 %v456_v37  ;;  %v168_v59 = vmul.f32 %v456_v37, %v456_v37 }
  0x97   :  { %v169_v1 = vmul.f32 %v454_v36, %v454_v36 }
  0x98   :  { %v463_v45 = vadd.f32 %v106_v18, %v103_v43  ;;  %v465_v46 = vadd.f32 %v105_v20, %v102_v44 }
  0x9a   :  { %144 = vadd.xlane.f32.xlu1 %v463_v45  ;;  %142 = vadd.xlane.f32.xlu0 %v465_v46  ;;  %v172_v3 = vmul.f32 %v463_v45, %v463_v45  ;;  %v171_v4 = vmul.f32 %v465_v46, %v465_v46 }
  0x9e   :  { %140 = vadd.xlane.f32.xlu1 %v139_v52  ;;  %126 = vadd.xlane.f32.xlu0 %v125_v53 }
  0xa2   :  { %174 = vadd.xlane.f32.xlu1 %v162_v54  ;;  %133 = vadd.xlane.f32.xlu0 %v132_v56 }
  0xa6   :  { %183 = vadd.xlane.f32.xlu1 %v166_v57  ;;  %147 = vadd.xlane.f32.xlu0 %v146_v58 }
  0xaa   :  { %188 = vadd.xlane.f32.xlu1 %v168_v59  ;;  %176 = vadd.xlane.f32.xlu0 %v163_v60 }
  0xae   :  { %179 = vadd.xlane.f32.xlu1 %v178_v63  ;;  %181 = vadd.xlane.f32.xlu0 %v165_v62 }
  0xb2   :  { %193 = vadd.xlane.f32.xlu1 %v192_v2  ;;  %190 = vadd.xlane.f32.xlu0 %v169_v1 }
  0xb6   :  { %197 = vadd.xlane.f32.xlu1 %v172_v3  ;;  %195 = vadd.xlane.f32.xlu0 %v171_v4 }
  0xba   :  { %186 = vadd.xlane.f32.xlu0 %v185_v6 }
  0xbe   :  { %200 = vadd.xlane.f32.xlu0 %v199_v8 }
 0x11b   :  { %v123_v9 = vpop.xlane.xlu1 %122  ;;  %v121_v10 = vpop.xlane.xlu0 %120 }
 0x11c   :  { %v513_v19 = vmul.f32 0.0078125, %v121_v10  ;;  %v521_v28 = vmul.f32 0.0078125, %v123_v9 }
 0x11e   :  { %v214_v22 = vmul.f32 %v513_v19, %v513_v19  ;;  %v215_v41 = vmul.f32 %v521_v28, %v521_v28 }
 0x11f   :  { %v131_v11 = vpop.xlane.xlu1 %130  ;;  %v129_v12 = vpop.xlane.xlu0 %128 }
 0x120   :  { %v519_v23 = vmul.f32 0.0078125, %v131_v11  ;;  %v535_v54 = vmul.f32 0.0078125, %v129_v12 }
 0x122   :  { %v218_v34 = vmul.f32 %v519_v23, %v519_v23  ;;  %v217_v3 = vmul.f32 %v535_v54, %v535_v54 }
 0x123   :  { %v136_v13 = vpop.xlane.xlu1 %135  ;;  %v138_v14 = vpop.xlane.xlu0 %137 }
 0x124   :  { %v523_v29 = vmul.f32 0.0078125, %v136_v13  ;;  %v537_v59 = vmul.f32 0.0078125, %v138_v14 }
 0x126   :  { %v220_v42 = vmul.f32 %v523_v29, %v523_v29  ;;  %v221_v8 = vmul.f32 %v537_v59, %v537_v59 }
 0x127   :  { %v145_v15 = vpop.xlane.xlu1 %144  ;;  %v143_v16 = vpop.xlane.xlu0 %142 }
 0x128   :  { %v547_v9 = vmul.f32 0.0078125, %v145_v15  ;;  %v558_v15 = vld [vmem:[%s662_s1 + $0x1] ss:$0 sm:$0xff] }
 0x12b   :  { %v141_v17 = vpop.xlane.xlu1 %140  ;;  %v127_v18 = vpop.xlane.xlu0 %126 }
 0x12c   :  { %v533_v43 = vmul.f32 0.0078125, %v127_v18  ;;  %v539_v60 = vmul.f32 0.0078125, %v141_v17 }
 0x12e   :  { %v216_v61 = vmul.f32 %v533_v43, %v533_v43  ;;  %v222_v10 = vmul.f32 %v539_v60, %v539_v60 }
 0x12f   :  { %v175_v20 = vpop.xlane.xlu1 %174  ;;  %v515_v21 = vpop.xlane.xlu0 %133 }
 0x130   :  { %v202_v26 = vmul.f32 0.0078125, %v175_v20  ;;  %v274_v20 = vsub.f32 %v444_v25, %v513_v19 }
 0x132   :  { %v226_v27 = vsub.f32 %v202_v26, %v214_v22  ;;  %v553_v22 = vmul.f32 0.0078125, %v143_v16  ;;  %v565_v16 = vmul.f32 0.0078125, %v515_v21 }
 0x133   :  { %v184_v32 = vpop.xlane.xlu1 %183  ;;  %v525_v33 = vpop.xlane.xlu0 %147 }
 0x134   :  { %v238_v35 = vmax.f32 %v226_v27, 0.0  ;;  %v206_v38 = vmul.f32 0.0078125, %v184_v32  ;;  %v278_v32 = vsub.f32 %v448_v30, %v519_v23 }
 0x136   :  { %v250_v39 = vadd.f32 1e-05, %v238_v35  ;;  %v230_v40 = vsub.f32 %v206_v38, %v218_v34 }
 0x137   :  { %v189_v44 = vpop.xlane.xlu1 %188  ;;  %v177_v49 = vpop.xlane.xlu0 %176 }
 0x138   :  { %352 = vrsqrt.f32 %v250_v39  ;;  %v242_v50 = vmax.f32 %v230_v40, 0.0  ;;  %v208_v52 = vmul.f32 0.0078125, %v189_v44  ;;  %v203_v53 = vmul.f32 0.0078125, %v177_v49 }
 0x139   :  { %v224_v39 = vmul.f32 %v547_v9, %v547_v9  ;;  %v223_v49 = vmul.f32 %v553_v22, %v553_v22 }
 0x13a   :  { %v254_v56 = vadd.f32 1e-05, %v242_v50  ;;  %v232_v57 = vsub.f32 %v208_v52, %v220_v42  ;;  %v227_v58 = vsub.f32 %v203_v53, %v215_v41  ;;  %v570_v42 = vld [vmem:[%s662_s1 + $0x2] ss:$0 sm:$0xff] }
 0x13b   :  { %v180_v62 = vpop.xlane.xlu1 %179  ;;  %v182_v63 = vpop.xlane.xlu0 %181 }
 0x13c   :  { %354 = vrsqrt.f32 %v254_v56  ;;  %v244_v0 = vmax.f32 %v232_v57, 0.0  ;;  %v239_v1 = vmax.f32 %v227_v58, 0.0  ;;  %v204_v2 = vmul.f32 0.0078125, %v180_v62 }
 0x13d   :  { %v205_v4 = vmul.f32 0.0078125, %v182_v63  ;;  %v577_v62 = vmul.f32 0.0078125, %v525_v33 }
 0x13e   :  { %v256_v5 = vadd.f32 1e-05, %v244_v0  ;;  %v251_v6 = vadd.f32 1e-05, %v239_v1  ;;  %v228_v7 = vsub.f32 %v204_v2, %v216_v61  ;;  %v219_v1 = vmul.f32 %v565_v16, %v565_v16 }
 0x13f   :  { %v229_v11 = vsub.f32 %v205_v4, %v217_v3  ;;  %v194_v12 = vpop.xlane.xlu1 %193  ;;  %v191_v13 = vpop.xlane.xlu0 %190  ;;  %v280_v4 = vsub.f32 %v456_v37, %v523_v29  ;;  %v225_v37 = vmul.f32 %v577_v62, %v577_v62 }
 0x140   :  { %356 = vrsqrt.f32 %v256_v5  ;;  %v240_v14 = vmax.f32 %v228_v7, 0.0  ;;  %v210_v17 = vmul.f32 0.0078125, %v194_v12  ;;  %v209_v18 = vmul.f32 0.0078125, %v191_v13 }
 0x141   :  { %358 = vrsqrt.f32 %v251_v6  ;;  %v241_v26 = vmax.f32 %v229_v11, 0.0  ;;  %v275_v7 = vsub.f32 %v442_v24, %v521_v28 }
 0x142   :  { %v353_v27 = vpop.eup %352  ;;  %v252_v34 = vadd.f32 1e-05, %v240_v14  ;;  %v234_v35 = vsub.f32 %v210_v17, %v222_v10  ;;  %v233_v38 = vsub.f32 %v209_v18, %v221_v8 }
 0x143   :  { %v286_v25 = vmul.f32 %v353_v27, %v274_v20  ;;  %v253_v19 = vadd.f32 1e-05, %v241_v26  ;;  %v198_v40 = vpop.xlane.xlu1 %197  ;;  %v196_v41 = vpop.xlane.xlu0 %195  ;;  %v276_v26 = vsub.f32 %v469_v48, %v533_v43  ;;  %v277_v27 = vsub.f32 %v450_v31, %v535_v54 }
 0x144   :  { %360 = vrsqrt.f32 %v252_v34  ;;  %v246_v30 = vmax.f32 %v234_v35, 0.0  ;;  %v245_v23 = vmax.f32 %v233_v38, 0.0  ;;  %v212_v44 = vmul.f32 0.0078125, %v198_v40 }
 0x145   :  { %v302_v50 = vmul.f32 %v558_v15, %v286_v25  ;;  %362 = vrsqrt.f32 %v253_v19  ;;  %v211_v21 = vmul.f32 0.0078125, %v196_v41  ;;  %v282_v40 = vsub.f32 %v467_v47, %v539_v60 }
 0x146   :  { %v355_v52 = vpop.eup %354  ;;  %v258_v53 = vadd.f32 1e-05, %v246_v30  ;;  %v257_v56 = vadd.f32 1e-05, %v245_v23  ;;  %v236_v57 = vsub.f32 %v212_v44, %v224_v39  ;;  %v281_v41 = vsub.f32 %v454_v36, %v537_v59 }
 0x147   :  { %v318_v58 = vadd.f32 %v570_v42, %v302_v50  ;;  %v290_v61 = vmul.f32 %v355_v52, %v278_v32  ;;  %v235_v63 = vsub.f32 %v211_v21, %v223_v49  ;;  %v187_v0 = vpop.xlane.xlu0 %186  ;;  %v284_v21 = vsub.f32 %v463_v45, %v547_v9 }
 0x148   :  { %364 = vrsqrt.f32 %v258_v53  ;;  %v248_v2 = vmax.f32 %v236_v57, 0.0  ;;  %v207_v3 = vmul.f32 0.0078125, %v187_v0  ;;  %v283_v52 = vsub.f32 %v465_v46, %v553_v22 }
 0x149   :  { %330 = vst [vmem:[%s664_s3] sm:$0xff] %v318_v58  ;;  %v306_v5 = vmul.f32 %v558_v15, %v290_v61  ;;  %366 = vrsqrt.f32 %v257_v56  ;;  %v247_v33 = vmax.f32 %v235_v63, 0.0  ;;  %v279_v61 = vsub.f32 %v473_v51, %v565_v16 }
 0x14a   :  { %v357_v6 = vpop.eup %356  ;;  %v260_v8 = vadd.f32 1e-05, %v248_v2  ;;  %v231_v10 = vsub.f32 %v207_v3, %v219_v1  ;;  %v285_v51 = vsub.f32 %v481_v55, %v577_v62 }
 0x14b   :  { %v359_v11 = vpop.eup %358  ;;  %v322_v12 = vadd.f32 %v570_v42, %v306_v5  ;;  %v292_v29 = vmul.f32 %v357_v6, %v280_v4  ;;  %v259_v13 = vadd.f32 1e-05, %v247_v33  ;;  %v201_v14 = vpop.xlane.xlu0 %200 }
 0x14c   :  { %v287_v17 = vmul.f32 %v359_v11, %v275_v7  ;;  %368 = vrsqrt.f32 %v260_v8  ;;  %v243_v18 = vmax.f32 %v231_v10, 0.0  ;;  %v213_v20 = vmul.f32 0.0078125, %v201_v14 }
 0x14d   :  { %334 = vst [vmem:[%s664_s3 + $0x20] sm:$0xff] %v322_v12  ;;  %v308_v24 = vmul.f32 %v558_v15, %v292_v29  ;;  %370 = vrsqrt.f32 %v259_v13 }
 0x14e   :  { %v361_v28 = vpop.eup %360  ;;  %v303_v32 = vmul.f32 %v558_v15, %v287_v17  ;;  %v255_v34 = vadd.f32 1e-05, %v243_v18  ;;  %v237_v35 = vsub.f32 %v213_v20, %v225_v37 }
 0x14f   :  { %v363_v38 = vpop.eup %362  ;;  %v324_v39 = vadd.f32 %v570_v42, %v308_v24  ;;  %v288_v25 = vmul.f32 %v361_v28, %v276_v26 }
 0x150   :  { %v319_v48 = vadd.f32 %v570_v42, %v303_v32  ;;  %v289_v43 = vmul.f32 %v363_v38, %v277_v27  ;;  %372 = vrsqrt.f32 %v255_v34  ;;  %v249_v19 = vmax.f32 %v237_v35, 0.0 }
 0x151   :  { %336 = vst [vmem:[%s664_s3 + $0x30] sm:$0xff] %v324_v39  ;;  %v304_v31 = vmul.f32 %v558_v15, %v288_v25 }
 0x152   :  { %v365_v54 = vpop.eup %364  ;;  %331 = vst [vmem:[%s664_s3 + $0x8] sm:$0xff] %v319_v48  ;;  %v305_v30 = vmul.f32 %v558_v15, %v289_v43  ;;  %v261_v23 = vadd.f32 1e-05, %v249_v19 }
 0x153   :  { %v367_v44 = vpop.eup %366  ;;  %v320_v47 = vadd.f32 %v570_v42, %v304_v31  ;;  %v294_v60 = vmul.f32 %v365_v54, %v282_v40 }
 0x154   :  { %v321_v49 = vadd.f32 %v570_v42, %v305_v30  ;;  %v293_v50 = vmul.f32 %v367_v44, %v281_v41  ;;  %374 = vrsqrt.f32 %v261_v23 }
 0x155   :  { %332 = vst [vmem:[%s664_s3 + $0x10] sm:$0x1] %v320_v47  ;;  %v310_v36 = vmul.f32 %v558_v15, %v294_v60 }
 0x156   :  { %v369_v59 = vpop.eup %368  ;;  %333 = vst [vmem:[%s664_s3 + $0x18] sm:$0xff] %v321_v49  ;;  %v309_v53 = vmul.f32 %v558_v15, %v293_v50 }
 0x157   :  { %v371_v56 = vpop.eup %370  ;;  %v326_v57 = vadd.f32 %v570_v42, %v310_v36  ;;  %v296_v45 = vmul.f32 %v369_v59, %v284_v21 }
 0x158   :  { %v325_v9 = vadd.f32 %v570_v42, %v309_v53  ;;  %v295_v58 = vmul.f32 %v371_v56, %v283_v52 }
 0x159   :  { %338 = vst [vmem:[%s664_s3 + $0x40] sm:$0x1] %v326_v57  ;;  %v312_v46 = vmul.f32 %v558_v15, %v296_v45 }
 0x15a   :  { %v373_v22 = vpop.eup %372  ;;  %337 = vst [vmem:[%s664_s3 + $0x38] sm:$0xff] %v325_v9  ;;  %v311_v63 = vmul.f32 %v558_v15, %v295_v58 }
 0x15b   :  { %v328_v0 = vadd.f32 %v570_v42, %v312_v46  ;;  %v291_v1 = vmul.f32 %v373_v22, %v279_v61 }
 0x15c   :  { %v327_v2 = vadd.f32 %v570_v42, %v311_v63 }
 0x15d   :  { %340 = vst [vmem:[%s664_s3 + $0x50] sm:$0xff] %v328_v0  ;;  %v307_v16 = vmul.f32 %v558_v15, %v291_v1 }
 0x15e   :  { %v375_v3 = vpop.eup %374  ;;  %339 = vst [vmem:[%s664_s3 + $0x48] sm:$0xff] %v327_v2 }
 0x15f   :  { %v323_v4 = vadd.f32 %v570_v42, %v307_v16  ;;  %v297_v5 = vmul.f32 %v375_v3, %v285_v51 }
 0x161   :  { %335 = vst [vmem:[%s664_s3 + $0x28] sm:$0x1] %v323_v4  ;;  %v313_v55 = vmul.f32 %v558_v15, %v297_v5 }
 0x163   :  { %v329_v62 = vadd.f32 %v570_v42, %v313_v55 }
 0x165   :  { %341 = vst [vmem:[%s664_s3 + $0x58] sm:$0x1] %v329_v62 }

</bundles_post_ra>
